<compile_context>
chip_gen: v7x
topology: tpu7x:2x2x1
jax: 0.10.0
libtpu: 0.0.40
codegen_flags: <defaults>
</compile_context>

<pallas_src>
import functools
import math

import jax
import jax.numpy as jnp
from jax.experimental import pallas as pl
from jax.experimental.pallas import tpu as pltpu

_LANE = 128        # minimum lane alignment (f32)
_WIDE_LANE = 256   # v6e/v7x MXU is 2x256x256 -> use 256 for wide layers
_SUBLANE = 8       # sublane alignment (f32)


def _round_up(x, m):
    return ((x + m - 1) // m) * m


def _pad_feature(f):
    """Pad a feature width: 128 granularity for narrow layers, 256 for >=256."""
    m = _WIDE_LANE if f >= _WIDE_LANE else _LANE
    return _round_up(f, m)


def _pick_batch_tile(batch):
    """Row-tile: 256 (v6e/v7x MXU rows) for big batches, 128 medium, 8-aligned toy."""
    if batch >= 256:
        return 256
    if batch >= 128:
        return 128
    return _round_up(max(batch, 1), _SUBLANE)


# ---------------------------------------------------------------------------
# Fused kernel: one batch tile through  L0 -> LeakyReLU -> ... -> L_last.
# Weights/biases are whole-array VMEM-resident; intermediate activations stay
# in registers/compiler-managed VMEM.
# ---------------------------------------------------------------------------
def _fused_mlp_kernel(*refs, n_layers, neg_slope, compute_dtype):
    x_ref = refs[0]
    o_ref = refs[-1]
    h = x_ref[...]                                     # [TILE_B, in_pad]  f32
    for i in range(n_layers):
        w = refs[1 + 2 * i][...]                       # [in_pad_i, out_pad_i] (compute_dtype)
        b = refs[2 + 2 * i][...]                       # [1, out_pad_i]        f32
        h = jnp.dot(h.astype(compute_dtype), w,
                    preferred_element_type=jnp.float32) + b
        if i < n_layers - 1:                           # last layer has no activation
            h = jnp.maximum(h, neg_slope * h)          # LeakyReLU (0 < slope < 1)
    o_ref[...] = h.astype(o_ref.dtype)


# ---------------------------------------------------------------------------
# Parameter init (PyTorch nn.Linear layout) and one-time preparation
# (transpose + zero-pad to lane-dense shapes + optional bf16 cast).
# ---------------------------------------------------------------------------
def init_mlp_params(key, n_inputs, n_hidden, n_classes):
    """PyTorch layout: W is (out_f, in_f), b is (out_f,)."""
    dims = [n_inputs] + list(n_hidden) + [n_classes]
    params = []
    for i in range(len(dims) - 1):
        in_f, out_f = dims[i], dims[i + 1]
        key, kw, kb = jax.random.split(key, 3)
        bound = 1.0 / math.sqrt(in_f)
        w = jax.random.uniform(kw, (out_f, in_f), jnp.float32, -bound, bound)
        b = jax.random.uniform(kb, (out_f,), jnp.float32, -bound, bound)
        params.append((w, b))
    return params


def prepare_params(params, compute_dtype=jnp.bfloat16):
    """One-time: transpose to (in, out), zero-pad, cast weights to MXU dtype.

    Zero padding keeps the math exact: padded input lanes hit zero weight rows,
    padded output lanes get zero weight columns + zero bias, so they stay
    exactly 0 through LeakyReLU and never leak into later layers.
    """
    prepped = []
    for w, b in params:
        out_f, in_f = w.shape
        in_p = _pad_feature(in_f)
        out_p = _pad_feature(out_f)
        w_t = jnp.zeros((in_p, out_p), jnp.float32).at[:in_f, :out_f].set(w.T)
        w_t = w_t.astype(compute_dtype)                # bf16 MXU operands (f32 acc)
        b_p = jnp.zeros((1, out_p), jnp.float32).at[0, :out_f].set(b)
        prepped.append((w_t, b_p))
    return prepped


def _vmem_limit_bytes(prepped, tile_b, in_pad):
    """Budget from actual buffers: resident weights (x2 safety) + double-buffered
    activation tiles + headroom; floored at the common 16 MiB default and capped
    below v7x's 64 MiB physical VMEM."""
    wb = sum(w.size * w.dtype.itemsize + b.size * b.dtype.itemsize
             for w, b in prepped)
    widths = [in_pad] + [w.shape[1] for w, _ in prepped]
    io = 2 * tile_b * (widths[0] + widths[-1]) * 4     # double-buffered x / out tiles
    act = 2 * tile_b * max(widths) * 4                 # intermediate-activation slack
    needed = 2 * wb + io + act + (2 << 20)
    return int(min(max(needed, 16 << 20), 60 << 20))


# ---------------------------------------------------------------------------
# Forward wrapper: pad x (if needed), one fused pallas_call over a batch grid,
# slice the real output back out (if needed).
# ---------------------------------------------------------------------------
@functools.partial(jax.jit, static_argnames=("neg_slope", "n_classes"))
def mlp_forward(x, prepped_params, *, neg_slope, n_classes):
    n_layers = len(prepped_params)
    B, n_in = x.shape
    compute_dtype = prepped_params[0][0].dtype

    tile_b = _pick_batch_tile(B)
    B_pad = _round_up(B, tile_b)
    in_pad = prepped_params[0][0].shape[0]
    out_pad = prepped_params[-1][0].shape[1]

    # Pad input only when necessary (zeros in padded lanes/rows).
    if (B_pad, in_pad) == (B, n_in):
        x_pad = x.astype(jnp.float32)
    else:
        x_pad = jnp.zeros((B_pad, in_pad), jnp.float32).at[:B, :n_in].set(x)

    flat_inputs = [x_pad]
    in_specs = [pl.BlockSpec((tile_b, in_pad), lambda i: (i, 0))]
    for w_t, b_p in prepped_params:
        flat_inputs.append(w_t)
        flat_inputs.append(b_p)
        # Constant index_map -> fetched once, VMEM-resident across batch tiles.
        in_specs.append(pl.BlockSpec(w_t.shape, lambda i: (0, 0)))
        in_specs.append(pl.BlockSpec(b_p.shape, lambda i: (0, 0)))

    kernel = functools.partial(
        _fused_mlp_kernel, n_layers=n_layers, neg_slope=neg_slope,
        compute_dtype=compute_dtype)

    out_padded = pl.pallas_call(
        kernel,
        grid=(B_pad // tile_b,),
        out_shape=jax.ShapeDtypeStruct((B_pad, out_pad), jnp.float32),
        in_specs=in_specs,
        out_specs=pl.BlockSpec((tile_b, out_pad), lambda i: (i, 0)),
        compiler_params=pltpu.CompilerParams(
            dimension_semantics=("parallel",),   # use both TCs on v7x
            vmem_limit_bytes=_vmem_limit_bytes(prepped_params, tile_b, in_pad),
        ),
    )(*flat_inputs)

    if (B_pad, out_pad) == (B, n_classes):
        return out_padded
    return out_padded[:B, :n_classes]


def mlp_forward_ref(x, params, neg_slope):
    """Pure-JAX reference (PyTorch-layout params) for correctness checking."""
    n_layers = len(params)
    for i, (w, b) in enumerate(params):
        x = x @ w.T + b
        if i < n_layers - 1:
            x = jnp.where(x >= 0.0, x, neg_slope * x)
    return x


if __name__ == "__main__":
    # Small shapes consistent with the module:
    # batch=2, n_inputs=32, n_hidden=[64, 32], n_classes=10, neg_slope=0.2
    batch = 2
    n_inputs = 32
    n_hidden = [64, 32]
    n_classes = 10
    neg_slope = 0.2

    key = jax.random.PRNGKey(0)
    kx, kp = jax.random.split(key)
    x = jax.random.normal(kx, (batch, n_inputs), dtype=jnp.float32)

    params = init_mlp_params(kp, n_inputs, n_hidden, n_classes)  # PyTorch layout
    ref = mlp_forward_ref(x, params, neg_slope)

    # 1) f32 MXU operands: exact-match check of the fused/padded/tiled structure.
    prepped_f32 = prepare_params(params, compute_dtype=jnp.float32)
    out_f32 = jax.block_until_ready(
        mlp_forward(x, prepped_f32, neg_slope=neg_slope, n_classes=n_classes))
    assert out_f32.shape == (batch, n_classes)
    assert jnp.allclose(out_f32, ref, atol=1e-5, rtol=1e-5)

    # 2) bf16 MXU operands (the fast path on v5e/v6e/v7x): relaxed tolerance.
    prepped_bf16 = prepare_params(params, compute_dtype=jnp.bfloat16)
    out_bf16 = jax.block_until_ready(
        mlp_forward(x, prepped_bf16, neg_slope=neg_slope, n_classes=n_classes))
    assert out_bf16.shape == (batch, n_classes)
    assert jnp.allclose(out_bf16, ref, atol=5e-2, rtol=5e-2)

    print("KERNEL_OK")
</pallas_src>

<mosaic_0001>
module attributes {stable_mosaic.version = 11 : i64} {
  func.func @_fused_mlp_kernel(%arg0: i32, %arg1: memref<8x128xf32, #tpu.memory_space<vmem>>, %arg2: memref<128x128xf32, #tpu.memory_space<vmem>>, %arg3: memref<1x128xf32, #tpu.memory_space<vmem>>, %arg4: memref<128x128xf32, #tpu.memory_space<vmem>>, %arg5: memref<1x128xf32, #tpu.memory_space<vmem>>, %arg6: memref<128x128xf32, #tpu.memory_space<vmem>>, %arg7: memref<1x128xf32, #tpu.memory_space<vmem>>, %arg8: memref<8x128xf32, #tpu.memory_space<vmem>>) attributes {dimension_semantics = [#tpu.dimension_semantics<parallel>], iteration_bounds = array<i64: 1>, scalar_prefetch = 0 : i64, scratch_operands = 0 : i64, tpu.core_type = #tpu.core_type<tc>, window_params = [{transform_indices = @transform_0, window_bounds = array<i64: 8, 128>}, {pipeline_mode = #tpu.pipeline_mode<synchronous>, transform_indices = @transform_1, window_bounds = array<i64: 128, 128>}, {pipeline_mode = #tpu.pipeline_mode<synchronous>, transform_indices = @transform_2, window_bounds = array<i64: 1, 128>}, {pipeline_mode = #tpu.pipeline_mode<synchronous>, transform_indices = @transform_3, window_bounds = array<i64: 128, 128>}, {pipeline_mode = #tpu.pipeline_mode<synchronous>, transform_indices = @transform_4, window_bounds = array<i64: 1, 128>}, {pipeline_mode = #tpu.pipeline_mode<synchronous>, transform_indices = @transform_5, window_bounds = array<i64: 128, 128>}, {pipeline_mode = #tpu.pipeline_mode<synchronous>, transform_indices = @transform_6, window_bounds = array<i64: 1, 128>}, {transform_indices = @transform_7, window_bounds = array<i64: 8, 128>}]} {
    %c0 = arith.constant 0 : index
    %c0_0 = arith.constant 0 : index
    %0 = vector.load %arg1[%c0, %c0_0] : memref<8x128xf32, #tpu.memory_space<vmem>>, vector<8x128xf32>
    %c0_1 = arith.constant 0 : index
    %c0_2 = arith.constant 0 : index
    %1 = vector.load %arg2[%c0_1, %c0_2] : memref<128x128xf32, #tpu.memory_space<vmem>>, vector<128x128xf32>
    %c0_3 = arith.constant 0 : index
    %c0_4 = arith.constant 0 : index
    %2 = vector.load %arg3[%c0_3, %c0_4] : memref<1x128xf32, #tpu.memory_space<vmem>>, vector<1x128xf32>
    %cst = arith.constant dense<0.000000e+00> : vector<8x128xf32>
    %3 = tpu.matmul %0, %1, %cst {dimension_numbers = #tpu.dot_dimension_numbers<[1], [0], [0], [1], [0, 0, 1, 1], [], []>} : vector<8x128xf32>, vector<128x128xf32>, vector<8x128xf32> -> vector<8x128xf32>
    %4 = vector.broadcast %2 : vector<1x128xf32> to vector<8x128xf32>
    %5 = arith.addf %3, %4 : vector<8x128xf32>
    %cst_5 = arith.constant 2.000000e-01 : f32
    %6 = vector.broadcast %cst_5 : f32 to vector<8x128xf32>
    %7 = arith.mulf %6, %5 : vector<8x128xf32>
    %8 = arith.maximumf %5, %7 : vector<8x128xf32>
    %c0_6 = arith.constant 0 : index
    %c0_7 = arith.constant 0 : index
    %9 = vector.load %arg4[%c0_6, %c0_7] : memref<128x128xf32, #tpu.memory_space<vmem>>, vector<128x128xf32>
    %c0_8 = arith.constant 0 : index
    %c0_9 = arith.constant 0 : index
    %10 = vector.load %arg5[%c0_8, %c0_9] : memref<1x128xf32, #tpu.memory_space<vmem>>, vector<1x128xf32>
    %cst_10 = arith.constant dense<0.000000e+00> : vector<8x128xf32>
    %11 = tpu.matmul %8, %9, %cst_10 {dimension_numbers = #tpu.dot_dimension_numbers<[1], [0], [0], [1], [0, 0, 1, 1], [], []>} : vector<8x128xf32>, vector<128x128xf32>, vector<8x128xf32> -> vector<8x128xf32>
    %12 = vector.broadcast %10 : vector<1x128xf32> to vector<8x128xf32>
    %13 = arith.addf %11, %12 : vector<8x128xf32>
    %cst_11 = arith.constant 2.000000e-01 : f32
    %14 = vector.broadcast %cst_11 : f32 to vector<8x128xf32>
    %15 = arith.mulf %14, %13 : vector<8x128xf32>
    %16 = arith.maximumf %13, %15 : vector<8x128xf32>
    %c0_12 = arith.constant 0 : index
    %c0_13 = arith.constant 0 : index
    %17 = vector.load %arg6[%c0_12, %c0_13] : memref<128x128xf32, #tpu.memory_space<vmem>>, vector<128x128xf32>
    %c0_14 = arith.constant 0 : index
    %c0_15 = arith.constant 0 : index
    %18 = vector.load %arg7[%c0_14, %c0_15] : memref<1x128xf32, #tpu.memory_space<vmem>>, vector<1x128xf32>
    %cst_16 = arith.constant dense<0.000000e+00> : vector<8x128xf32>
    %19 = tpu.matmul %16, %17, %cst_16 {dimension_numbers = #tpu.dot_dimension_numbers<[1], [0], [0], [1], [0, 0, 1, 1], [], []>} : vector<8x128xf32>, vector<128x128xf32>, vector<8x128xf32> -> vector<8x128xf32>
    %20 = vector.broadcast %18 : vector<1x128xf32> to vector<8x128xf32>
    %21 = arith.addf %19, %20 : vector<8x128xf32>
    %c0_17 = arith.constant 0 : index
    %c0_18 = arith.constant 0 : index
    %22 = vector.load %arg8[%c0_17, %c0_18] : memref<8x128xf32, #tpu.memory_space<vmem>>, vector<8x128xf32>
    tpu.vector_store %arg8[%c0_17, %c0_18], %21 {strides = array<i32>} : memref<8x128xf32, #tpu.memory_space<vmem>>, vector<8x128xf32>,
    return
  }
  func.func @transform_0(%arg0: i32) -> (i32, i32) {
    %c0_i32 = arith.constant 0 : i32
    %c0_i32_0 = arith.constant 0 : i32
    return %arg0, %c0_i32 : i32, i32
  }
  func.func @transform_1(%arg0: i32) -> (i32, i32) {
    %c0_i32 = arith.constant 0 : i32
    %c0_i32_0 = arith.constant 0 : i32
    %c0_i32_1 = arith.constant 0 : i32
    return %c0_i32, %c0_i32_0 : i32, i32
  }
  func.func @transform_2(%arg0: i32) -> (i32, i32) {
    %c0_i32 = arith.constant 0 : i32
    %c0_i32_0 = arith.constant 0 : i32
    %c0_i32_1 = arith.constant 0 : i32
    return %c0_i32, %c0_i32_0 : i32, i32
  }
  func.func @transform_3(%arg0: i32) -> (i32, i32) {
    %c0_i32 = arith.constant 0 : i32
    %c0_i32_0 = arith.constant 0 : i32
    %c0_i32_1 = arith.constant 0 : i32
    return %c0_i32, %c0_i32_0 : i32, i32
  }
  func.func @transform_4(%arg0: i32) -> (i32, i32) {
    %c0_i32 = arith.constant 0 : i32
    %c0_i32_0 = arith.constant 0 : i32
    %c0_i32_1 = arith.constant 0 : i32
    return %c0_i32, %c0_i32_0 : i32, i32
  }
  func.func @transform_5(%arg0: i32) -> (i32, i32) {
    %c0_i32 = arith.constant 0 : i32
    %c0_i32_0 = arith.constant 0 : i32
    %c0_i32_1 = arith.constant 0 : i32
    return %c0_i32, %c0_i32_0 : i32, i32
  }
  func.func @transform_6(%arg0: i32) -> (i32, i32) {
    %c0_i32 = arith.constant 0 : i32
    %c0_i32_0 = arith.constant 0 : i32
    %c0_i32_1 = arith.constant 0 : i32
    return %c0_i32, %c0_i32_0 : i32, i32
  }
  func.func @transform_7(%arg0: i32) -> (i32, i32) {
    %c0_i32 = arith.constant 0 : i32
    %c0_i32_0 = arith.constant 0 : i32
    return %arg0, %c0_i32 : i32, i32
  }
}

</mosaic_0001>

<bundles_post_ra>
// kernel: mlp_forward.1
= control target key start
LH: loop header
LB: loop body
LE: loop exit
PB: predicated region body
PF: predicated region fallthrough
CT: control target
= control target key end

     0   :  { %12 = vsyncpa [#allocation3], 0  ;;  %s812_s0 = inlined_call_operand.vmem [shape: f32[8,128], index: 0, kind: input, shape index: {}]   ;;  %s813_s1 = inlined_call_operand.hbm [shape: f32[128,128], index: 1, kind: input, shape index: {}]   ;;  %s814_s2 = inlined_call_operand.vmem [shape: f32[1,128], index: 2, kind: input, shape index: {}]   ;;  %s815_s3 = inlined_call_operand.hbm [shape: f32[128,128], index: 3, kind: input, shape index: {}]   ;;  %s816_s4 = inlined_call_operand.vmem [shape: f32[1,128], index: 4, kind: input, shape index: {}]   ;;  %s817_s5 = inlined_call_operand.hbm [shape: f32[128,128], index: 5, kind: input, shape index: {}]   ;;  %s818_s6 = inlined_call_operand.vmem [shape: f32[1,128], index: 6, kind: input, shape index: {}]   ;;  %s819_s7 = inlined_call_operand.vmem [shape: f32[8,128], index: 7, kind: output, shape index: {}]  }
   0x1   :  { %13 = vsyncpa [#allocation5], 0  ;;  %s667_s24 = smov [#allocation4]   ;;  %s668_s26 = smov [#allocation2]  }
   0x2   :  { %s35_s25 = sshll.u32 %s667_s24, 4  ;;  %s21_s27 = sshll.u32 %s668_s26, 4  ;;  %s36_s25 = int_to_ptr.vmem [resolvable:$true] %s35_s25  ;;  %s715_s27 = int_to_ptr.vmem [resolvable:$true] %s21_s27 }
   0x3   :  { %s597_s30 = scalar_lea.hbm %s815_s3, 2048 }
   0x4   :  { %p598_p0 = scmp.ne.s32.totalorder %s815_s3, %s597_s30  ;;  %p601_p1 = scmp.lt.u32.totalorder %s597_s30, %s815_s3 }
   0x6   :  { %p603_p2 = pnand %p601_p1, %p598_p0 }
   0x8   :  { %606 = shalt.err (!%p603_p2)
}
   0x9   :  { %s607_s12 = scalar_lea.vmem %s36_s25, 2048  ;;  %p612_p4 = scmp.lt.s32.totalorder %s36_s25, %s36_s25 }
   0xa   :  { %p608_p3 = scmp.ne.s32.totalorder %s36_s25, %s607_s12  ;;  %p613_p5 = scmp.lt.s32.totalorder %s607_s12, %s607_s12 }
   0xc   :  { %p614_p6 = por %p613_p5, %p612_p4 }
   0xe   :  { %p615_p7 = pnand %p614_p6, %p608_p3 }
  0x10   :  { %618 = shalt.err (!%p615_p7)
}
  0x11   :  { %s669_s13 = smov 128   ;;  %s670_s14 = smov 8  }
  0x12   :  { %41 = dma.hbm_to_vmem [thread:$0]  %s815_s3, 2048, %s36_s25, [#allocation5], %s669_s13, %s669_s13, %s670_s14  }
  0x13   :  { %s619_s19 = scalar_lea.hbm %s813_s1, 2048 }
  0x14   :  { %p620_p8 = scmp.ne.s32.totalorder %s813_s1, %s619_s19  ;;  %p623_p9 = scmp.lt.u32.totalorder %s619_s19, %s813_s1 }
  0x16   :  { %p625_p10 = pnand %p623_p9, %p620_p8 }
  0x18   :  { %628 = shalt.err (!%p625_p10)
}
  0x19   :  { %s629_s24 = scalar_lea.vmem %s715_s27, 2048  ;;  %p634_p12 = scmp.lt.s32.totalorder %s715_s27, %s715_s27 }
  0x1a   :  { %p630_p11 = scmp.ne.s32.totalorder %s715_s27, %s629_s24  ;;  %p635_p13 = scmp.lt.s32.totalorder %s629_s24, %s629_s24 }
  0x1c   :  { %p636_p0 = por %p635_p13, %p634_p12 }
  0x1e   :  { %p637_p1 = pnand %p636_p0, %p630_p11 }
  0x20   :  { %640 = shalt.err (!%p637_p1)
}
  0x21   :  { %27 = dma.hbm_to_vmem [thread:$0]  %s813_s1, 2048, %s715_s27, [#allocation3], %s669_s13, %s669_s13, %s670_s14  }
  0x22   :  { %s671_s26 = smov [#allocation6]   ;;  %s641_s8 = scalar_lea.hbm %s817_s5, 2048 }
  0x23   :  { %s49_s28 = sshll.u32 %s671_s26, 4  ;;  %p642_p2 = scmp.ne.s32.totalorder %s817_s5, %s641_s8  ;;  %s50_s28 = int_to_ptr.vmem [resolvable:$true] %s49_s28 }
  0x24   :  { %p645_p3 = scmp.lt.u32.totalorder %s641_s8, %s817_s5 }
  0x26   :  { %p647_p4 = pnand %p645_p3, %p642_p2 }
  0x28   :  { %650 = shalt.err (!%p647_p4)
}
  0x29   :  { %s651_s15 = scalar_lea.vmem %s50_s28, 2048  ;;  %p656_p6 = scmp.lt.s32.totalorder %s50_s28, %s50_s28 }
  0x2a   :  { %p652_p5 = scmp.ne.s32.totalorder %s50_s28, %s651_s15  ;;  %p657_p7 = scmp.lt.s32.totalorder %s651_s15, %s651_s15 }
  0x2c   :  { %p658_p8 = por %p657_p7, %p656_p6 }
  0x2e   :  { %p659_p9 = pnand %p658_p8, %p652_p5 }
  0x30   :  { %662 = shalt.err (!%p659_p9)
}
  0x31   :  { %55 = dma.hbm_to_vmem [thread:$0]  %s817_s5, 2048, %s50_s28, [#allocation5], %s669_s13, %s669_s13, %s670_s14  }
  0x32   :  { %663 = dma.done.wait [#allocation3], 2048  }
  0x33   :  { %664 = vsyncadd [#allocation3], 4294965248 }
  0x34   :  { %665 = dma.done.wait [#allocation5], 4096  }
  0x35   :  { %666 = vsyncadd [#allocation5], 4294963200  ;;  %v672_v0 = vmov 0.0|0.0   ;;  %vm673_vm0 = vmmov 0   ;;  %v674_v1 = vmov 0.0   ;;  %v68_v2 = vld [vmem:[#allocation2] sm:$0xff] }
  0x36   :  { %517 = vmatprep.subr.bf16.mxu0 %v672_v0  ;;  %444 = vmatprep.mubr.msk.f32.mxu0 %vm673_vm0, %v674_v1  ;;  %v69_v3 = vld [vmem:[#allocation2 + $0x8] sm:$0xff]  ;;  %v70_v4 = vld [vmem:[#allocation2 + $0x10] sm:$0xff]  ;;  %v71_v6 = vld [vmem:[#allocation2 + $0x18] sm:$0xff] }
  0x37   :  { %541 = vmatprep.subr.bf16.mxu1 %v672_v0  ;;  %479 = vmatprep.mubr.msk.f32.mxu1 %vm673_vm0, %v674_v1  ;;  %v518_v5 = vpack.c.bf16 %v69_v3, %v68_v2  ;;  %v521_v7 = vpack.c.bf16 %v71_v6, %v70_v4  ;;  %v72_v8 = vld [vmem:[#allocation2 + $0x20] sm:$0xff]  ;;  %v73_v9 = vld [vmem:[#allocation2 + $0x28] sm:$0xff]  ;;  %v165_v12 = vld [vmem:[#allocation4 + $0x10] sm:$0xff] }
  0x38   :  { %v163_v10 = vld [vmem:[#allocation4] sm:$0xff]  ;;  %v164_v11 = vld [vmem:[#allocation4 + $0x8] sm:$0xff]  ;;  %v166_v13 = vld [vmem:[#allocation4 + $0x18] sm:$0xff]  ;;  %v524_v14 = vpack.c.bf16 %v73_v9, %v72_v8 }
  0x39   :  { %519 = vmatpush3.bf16.msra.mxu0 %v518_v5  ;;  %v542_v15 = vpack.c.bf16 %v164_v11, %v163_v10  ;;  %v74_v16 = vld [vmem:[#allocation2 + $0x30] sm:$0xff]  ;;  %v75_v17 = vld [vmem:[#allocation2 + $0x38] sm:$0xff]  ;;  %v545_v18 = vpack.c.bf16 %v166_v13, %v165_v12  ;;  %v167_v19 = vld [vmem:[#allocation4 + $0x20] sm:$0xff] }
  0x3a   :  { %520 = vmatprep.subr.bf16.mxu0 %v672_v0  ;;  %v168_v20 = vld [vmem:[#allocation4 + $0x28] sm:$0xff]  ;;  %v527_v21 = vpack.c.bf16 %v75_v17, %v74_v16  ;;  %v76_v22 = vld [vmem:[#allocation2 + $0x40] sm:$0xff]  ;;  %v169_v25 = vld [vmem:[#allocation4 + $0x30] sm:$0xff] }
  0x3b   :  { %543 = vmatpush3.bf16.msra.mxu1 %v542_v15  ;;  %v77_v23 = vld [vmem:[#allocation2 + $0x48] sm:$0xff]  ;;  %v548_v24 = vpack.c.bf16 %v168_v20, %v167_v19  ;;  %v170_v26 = vld [vmem:[#allocation4 + $0x38] sm:$0xff]  ;;  %v78_v28 = vld [vmem:[#allocation2 + $0x50] sm:$0xff] }
  0x3c   :  { %544 = vmatprep.subr.bf16.mxu1 %v672_v0  ;;  %v530_v27 = vpack.c.bf16 %v77_v23, %v76_v22  ;;  %v79_v29 = vld [vmem:[#allocation2 + $0x58] sm:$0xff]  ;;  %v551_v30 = vpack.c.bf16 %v170_v26, %v169_v25  ;;  %v171_v31 = vld [vmem:[#allocation4 + $0x40] sm:$0xff]  ;;  %v172_v32 = vld [vmem:[#allocation4 + $0x48] sm:$0xff] }
  0x3d   :  { %522 = vmatpush3.bf16.msra.mxu0 %v521_v7  ;;  %v533_v33 = vpack.c.bf16 %v79_v29, %v78_v28  ;;  %v80_v34 = vld [vmem:[#allocation2 + $0x60] sm:$0xff]  ;;  %v81_v35 = vld [vmem:[#allocation2 + $0x68] sm:$0xff]  ;;  %v554_v36 = vpack.c.bf16 %v172_v32, %v171_v31  ;;  %v173_v37 = vld [vmem:[#allocation4 + $0x50] sm:$0xff] }
  0x3e   :  { %523 = vmatprep.subr.bf16.mxu0 %v672_v0  ;;  %v174_v38 = vld [vmem:[#allocation4 + $0x58] sm:$0xff]  ;;  %v536_v39 = vpack.c.bf16 %v81_v35, %v80_v34  ;;  %v82_v40 = vld [vmem:[#allocation2 + $0x70] sm:$0xff]  ;;  %v67_v44 = vld [vmem:[%s812_s0] sm:$0xff] }
  0x3f   :  { %546 = vmatpush3.bf16.msra.mxu1 %v545_v18  ;;  %v83_v41 = vld [vmem:[#allocation2 + $0x78] sm:$0xff]  ;;  %v557_v42 = vpack.c.bf16 %v174_v38, %v173_v37  ;;  %v175_v45 = vld [vmem:[#allocation4 + $0x60] sm:$0xff]  ;;  %v176_v46 = vld [vmem:[#allocation4 + $0x68] sm:$0xff] }
  0x40   :  { %547 = vmatprep.subr.bf16.mxu1 %v672_v0  ;;  %v539_v43 = vpack.c.bf16 %v83_v41, %v82_v40  ;;  %v560_v47 = vpack.c.bf16 %v176_v46, %v175_v45  ;;  %v177_v48 = vld [vmem:[#allocation4 + $0x70] sm:$0xff]  ;;  %v178_v49 = vld [vmem:[#allocation4 + $0x78] sm:$0xff]  ;;  %v258_v51 = vld [vmem:[#allocation6] sm:$0xff] }
  0x41   :  { %525 = vmatpush3.bf16.msra.mxu0 %v524_v14  ;;  %v563_v50 = vpack.c.bf16 %v178_v49, %v177_v48  ;;  %v259_v52 = vld [vmem:[#allocation6 + $0x8] sm:$0xff]  ;;  %v260_v53 = vld [vmem:[#allocation6 + $0x10] sm:$0xff]  ;;  %v261_v55 = vld [vmem:[#allocation6 + $0x18] sm:$0xff] }
  0x42   :  { %526 = vmatprep.subr.bf16.mxu0 %v672_v0  ;;  %v566_v54 = vpack.c.bf16 %v259_v52, %v258_v51  ;;  %v569_v56 = vpack.c.bf16 %v261_v55, %v260_v53  ;;  %v262_v57 = vld [vmem:[#allocation6 + $0x20] sm:$0xff]  ;;  %v263_v58 = vld [vmem:[#allocation6 + $0x28] sm:$0xff]  ;;  %v264_v60 = vld [vmem:[#allocation6 + $0x30] sm:$0xff] }
  0x43   :  { %549 = vmatpush3.bf16.msra.mxu1 %v548_v24  ;;  %v572_v59 = vpack.c.bf16 %v263_v58, %v262_v57  ;;  %v265_v61 = vld [vmem:[#allocation6 + $0x38] sm:$0xff]  ;;  %v266_v63 = vld [vmem:[#allocation6 + $0x40] sm:$0xff]  ;;  %v268_v3 = vld [vmem:[#allocation6 + $0x50] sm:$0xff] }
  0x44   :  { %550 = vmatprep.subr.bf16.mxu1 %v672_v0  ;;  %v575_v62 = vpack.c.bf16 %v265_v61, %v264_v60  ;;  %v269_v4 = vld [vmem:[#allocation6 + $0x58] sm:$0xff]  ;;  %v358_v6 = vld [vmem:[%s814_s2] ss:$0 sm:$0xff]  ;;  %v271_v13 = vld [vmem:[#allocation6 + $0x68] sm:$0xff] }
  0x45   :  { %528 = vmatpush3.bf16.msra.mxu0 %v527_v21  ;;  %v581_v5 = vpack.c.bf16 %v269_v4, %v268_v3  ;;  %v270_v12 = vld [vmem:[#allocation6 + $0x60] sm:$0xff]  ;;  %v272_v15 = vld [vmem:[#allocation6 + $0x70] sm:$0xff]  ;;  %v273_v16 = vld [vmem:[#allocation6 + $0x78] sm:$0xff] }
  0x46   :  { %529 = vmatprep.subr.bf16.mxu0 %v672_v0  ;;  %v584_v14 = vpack.c.bf16 %v271_v13, %v270_v12  ;;  %v587_v17 = vpack.c.bf16 %v273_v16, %v272_v15  ;;  %v359_v18 = vld [vmem:[%s816_s4] ss:$0 sm:$0xff] }
  0x47   :  { %552 = vmatpush3.bf16.msra.mxu1 %v551_v30  ;;  %v360_v24 = vld [vmem:[%s818_s6] ss:$0 sm:$0xff] }
  0x48   :  { %553 = vmatprep.subr.bf16.mxu1 %v672_v0 }
  0x49   :  { %531 = vmatpush3.bf16.msra.mxu0 %v530_v27 }
  0x4a   :  { %532 = vmatprep.subr.bf16.mxu0 %v672_v0 }
  0x4b   :  { %555 = vmatpush3.bf16.msra.mxu1 %v554_v36 }
  0x4c   :  { %556 = vmatprep.subr.bf16.mxu1 %v672_v0 }
  0x4d   :  { %534 = vmatpush3.bf16.msra.mxu0 %v533_v33 }
  0x4e   :  { %535 = vmatprep.subr.bf16.mxu0 %v672_v0 }
  0x4f   :  { %558 = vmatpush3.bf16.msra.mxu1 %v557_v42 }
  0x50   :  { %559 = vmatprep.subr.bf16.mxu1 %v672_v0 }
  0x51   :  { %537 = vmatpush3.bf16.msra.mxu0 %v536_v39 }
  0x52   :  { %538 = vmatprep.subr.bf16.mxu0 %v672_v0 }
  0x53   :  { %561 = vmatpush3.bf16.msra.mxu1 %v560_v47 }
  0x54   :  { %562 = vmatprep.subr.bf16.mxu1 %v672_v0 }
  0x55   :  { %540 = vmatpush3.bf16.msra.mxu0 %v539_v43 }
  0x56   :  { %565 = vmatprep.subr.bf16.mxu0 %v672_v0 }
  0x57   :  { %564 = vmatpush3.bf16.msra.mxu1 %v563_v50 }
  0x58   :  { %445 = vmatmul.mubr.f32.vlgmr.msra.gmra.mrb[0].mxu0 %v67_v44 }
  0x59   :  { %514 = vmatprep.mubr.msk.f32.mxu0 %vm673_vm0, %v674_v1  ;;  %567 = vmatpush3.bf16.msra.mxu0 %v566_v54  ;;  %v267_v1 = vld [vmem:[#allocation6 + $0x48] sm:$0xff] }
  0x5a   :  { %568 = vmatprep.subr.bf16.mxu0 %v672_v0  ;;  %v578_v2 = vpack.c.bf16 %v267_v1, %v266_v63 }
  0x5d   :  { %570 = vmatpush3.bf16.msra.mxu0 %v569_v56 }
  0x5e   :  { %571 = vmatprep.subr.bf16.mxu0 %v672_v0 }
  0x61   :  { %573 = vmatpush3.bf16.msra.mxu0 %v572_v59 }
  0x62   :  { %574 = vmatprep.subr.bf16.mxu0 %v672_v0 }
  0x65   :  { %576 = vmatpush3.bf16.msra.mxu0 %v575_v62 }
  0x66   :  { %577 = vmatprep.subr.bf16.mxu0 %v672_v0 }
  0x69   :  { %579 = vmatpush3.bf16.msra.mxu0 %v578_v2 }
  0x6a   :  { %580 = vmatprep.subr.bf16.mxu0 %v672_v0 }
  0x6d   :  { %582 = vmatpush3.bf16.msra.mxu0 %v581_v5 }
  0x6e   :  { %583 = vmatprep.subr.bf16.mxu0 %v672_v0 }
  0x71   :  { %585 = vmatpush3.bf16.msra.mxu0 %v584_v14 }
  0x72   :  { %586 = vmatprep.subr.bf16.mxu0 %v672_v0 }
  0x75   :  { %588 = vmatpush3.bf16.msra.mxu0 %v587_v17 }
 0x12b   :  { %v157_v7 = vpop.f32.mrb[0].mxu0 }
 0x12c   :  { %v158_v8 = vadd.f32 %v358_v6, %v157_v7  ;;  %v446_v9 = vpop.f32.mrb[1].mxu0 }
 0x12e   :  { %v161_v10 = vmul.f32 0.2, %v158_v8 }
 0x130   :  { %v162_v11 = vmax.f32 %v158_v8, %v161_v10 }
 0x132   :  { %480 = vmatmul.mubr.f32.vlgmr.msra.gmra.mrb[0].mxu1 %v162_v11 }
 0x205   :  { %v252_v19 = vpop.f32.mrb[0].mxu1 }
 0x206   :  { %v253_v20 = vadd.f32 %v359_v18, %v252_v19  ;;  %v481_v21 = vpop.f32.mrb[1].mxu1 }
 0x208   :  { %v256_v22 = vmul.f32 0.2, %v253_v20 }
 0x20a   :  { %v257_v23 = vmax.f32 %v253_v20, %v256_v22 }
 0x20c   :  { %515 = vmatmul.mubr.f32.vlgmr.msra.gmra.mrb[2].mxu0 %v257_v23 }
 0x2df   :  { %v347_v25 = vpop.f32.mrb[2].mxu0 }
 0x2e0   :  { %v348_v0 = vadd.f32 %v360_v24, %v347_v25  ;;  %v516_v26 = vpop.f32.mrb[3].mxu0 }
 0x2e2   :  { %351 = vst [vmem:[%s819_s7] sm:$0xff] %v348_v0 }
 0x2e3   :  { %356 = vsyncpa [#allocation3], 1 }
 0x2e4   :  { %357 = vsyncpa [#allocation5], 1 }

</bundles_post_ra>
